<compile_context>
chip_gen: v7x
topology: tpu7x:2x2x1
jax: 0.10.0
libtpu: 0.0.40
codegen_flags: <defaults>
</compile_context>

<pallas_src>
import functools
import math

import jax
import jax.numpy as jnp
from jax.experimental import pallas as pl
from jax.experimental.pallas import tpu as pltpu


def se_block_kernel(x_ref, w1t_ref, b1_ref, w2t_ref, b2_ref, o_ref, *, inv_L):
    x = x_ref[...]                                     # (Bt, C, L) float32

    # Squeeze: global average pool over time (lane axis), batched over the tile.
    s = jnp.sum(x, axis=-1) * inv_L                    # (Bt, C)

    # Excitation: 1x1 convs == channel-mixing matmuls, batched across Bt rows.
    h = jnp.dot(s, w1t_ref[...], preferred_element_type=jnp.float32) + b1_ref[...]   # (Bt, SE)
    h = jnp.maximum(h, 0.0)                            # ReLU
    g = jnp.dot(h, w2t_ref[...], preferred_element_type=jnp.float32) + b2_ref[...]   # (Bt, C)
    g = 1.0 / (1.0 + jnp.exp(-g))                      # exact sigmoid (only Bt*C values)

    # Scale: per-(batch, channel) gate broadcast along the time (lane) axis.
    o_ref[...] = (x * g[:, :, None]).astype(o_ref.dtype)


def _choose_batch_tile(B, C, L, itemsize, target_bytes=2 << 20):
    """Largest divisor of B whose (Bt, C, L) block is <= ~target_bytes, keeping
    >=2 grid steps (for v7x megacore) whenever B >= 2."""
    per_batch = C * L * itemsize
    cap = max(1, target_bytes // per_batch)
    if B >= 2:
        cap = min(cap, B // 2)          # keep at least 2 grid steps
    cap = max(1, min(cap, B))
    for d in range(cap, 0, -1):         # largest divisor of B <= cap
        if B % d == 0:
            return d
    return 1


def se_block(x, w1, b1, w2, b2):
    # TODO(synk): the optional `lengths` masked-mean branch of SEBlock.forward is
    # not implemented; this is the default (lengths=None) path.
    B, C, L = x.shape
    se = w1.shape[0]
    assert w1.shape == (se, C)
    assert w2.shape == (C, se), "SEBlock requires out_channels == in_channels"

    itemsize = jnp.dtype(x.dtype).itemsize
    Bt = _choose_batch_tile(B, C, L, itemsize)
    grid = (B // Bt,)

    # Pre-transpose tiny weights once in the wrapper so the kernel's matmuls are
    # (Bt,C)@(C,SE) and (Bt,SE)@(SE,C) with no in-kernel transposes.
    w1t = jnp.asarray(w1, jnp.float32).T               # (C, SE)
    w2t = jnp.asarray(w2, jnp.float32).T               # (SE, C)
    b1r = jnp.asarray(b1, jnp.float32).reshape(1, se)  # (1, SE)
    b2r = jnp.asarray(b2, jnp.float32).reshape(1, C)   # (1, C)

    kernel = functools.partial(se_block_kernel, inv_L=1.0 / float(L))

    return pl.pallas_call(
        kernel,
        out_shape=jax.ShapeDtypeStruct((B, C, L), x.dtype),
        grid=grid,
        in_specs=[
            pl.BlockSpec((Bt, C, L), lambda b: (b, 0, 0)),   # x tile (pipelined over batch)
            pl.BlockSpec((C, se), lambda b: (0, 0)),         # conv1 weight^T (VMEM-resident)
            pl.BlockSpec((1, se), lambda b: (0, 0)),         # conv1 bias
            pl.BlockSpec((se, C), lambda b: (0, 0)),         # conv2 weight^T (VMEM-resident)
            pl.BlockSpec((1, C), lambda b: (0, 0)),          # conv2 bias
        ],
        out_specs=pl.BlockSpec((Bt, C, L), lambda b: (b, 0, 0)),
        compiler_params=pltpu.CompilerParams(
            dimension_semantics=("parallel",),               # megacore sharding on v7x
        ),
    )(x, w1t, b1r, w2t, b2r)


def se_block_ref(x, w1, b1, w2, b2):
    """Pure-JAX reference matching the PyTorch forward (lengths=None)."""
    s = jnp.mean(x, axis=2, keepdims=True)                               # (B, C, 1)
    h = jnp.maximum(jnp.einsum("oc,bci->boi", w1, s) + b1[None, :, None], 0.0)
    g = jax.nn.sigmoid(jnp.einsum("oc,bci->boi", w2, h) + b2[None, :, None])
    return g * x


def init_params(key, in_channels, se_channels, out_channels):
    """Deterministic init mirroring nn.Conv1d(kernel_size=1) defaults."""
    k1w, k1b, k2w, k2b = jax.random.split(key, 4)
    bound1 = 1.0 / math.sqrt(in_channels)          # fan_in = in_channels * 1
    w1 = jax.random.uniform(k1w, (se_channels, in_channels), jnp.float32, -bound1, bound1)
    b1 = jax.random.uniform(k1b, (se_channels,), jnp.float32, -bound1, bound1)
    bound2 = 1.0 / math.sqrt(se_channels)
    w2 = jax.random.uniform(k2w, (out_channels, se_channels), jnp.float32, -bound2, bound2)
    b2 = jax.random.uniform(k2b, (out_channels,), jnp.float32, -bound2, bound2)
    return w1, b1, w2, b2


if __name__ == "__main__":
    key = jax.random.PRNGKey(0)
    kx, kp = jax.random.split(key)

    # in_channels == out_channels (required for `s * x` broadcast in the module)
    B, C, SE, L = 4, 64, 16, 256
    x = jax.random.normal(kx, (B, C, L), dtype=jnp.float32)
    w1, b1, w2, b2 = init_params(kp, C, SE, C)

    out = se_block(x, w1, b1, w2, b2)
    out = jax.block_until_ready(out)

    ref = se_block_ref(x, w1, b1, w2, b2)
    assert out.shape == (B, C, L)
    assert bool(jnp.all(jnp.isfinite(out)))
    assert bool(jnp.allclose(out, ref, rtol=1e-4, atol=1e-5))
    print("KERNEL_OK")
</pallas_src>

<mosaic_0001>
module attributes {stable_mosaic.version = 11 : i64} {
  func.func @se_block_kernel(%arg0: i32, %arg1: memref<2x64x256xf32, #tpu.memory_space<vmem>>, %arg2: memref<64x16xf32, #tpu.memory_space<vmem>>, %arg3: memref<1x16xf32, #tpu.memory_space<vmem>>, %arg4: memref<16x64xf32, #tpu.memory_space<vmem>>, %arg5: memref<1x64xf32, #tpu.memory_space<vmem>>, %arg6: memref<2x64x256xf32, #tpu.memory_space<vmem>>) attributes {dimension_semantics = [#tpu.dimension_semantics<parallel>], iteration_bounds = array<i64: 2>, scalar_prefetch = 0 : i64, scratch_operands = 0 : i64, tpu.core_type = #tpu.core_type<tc>, window_params = [{transform_indices = @transform_0, window_bounds = array<i64: 2, 64, 256>}, {pipeline_mode = #tpu.pipeline_mode<synchronous>, transform_indices = @transform_1, window_bounds = array<i64: 64, 16>}, {pipeline_mode = #tpu.pipeline_mode<synchronous>, transform_indices = @transform_2, window_bounds = array<i64: 1, 16>}, {pipeline_mode = #tpu.pipeline_mode<synchronous>, transform_indices = @transform_3, window_bounds = array<i64: 16, 64>}, {pipeline_mode = #tpu.pipeline_mode<synchronous>, transform_indices = @transform_4, window_bounds = array<i64: 1, 64>}, {transform_indices = @transform_5, window_bounds = array<i64: 2, 64, 256>}]} {
    %c0 = arith.constant 0 : index
    %c0_0 = arith.constant 0 : index
    %c0_1 = arith.constant 0 : index
    %0 = vector.load %arg1[%c0, %c0_0, %c0_1] : memref<2x64x256xf32, #tpu.memory_space<vmem>>, vector<2x64x256xf32>
    %cst = arith.constant dense<0.000000e+00> : vector<2x64xf32>
    %1 = vector.multi_reduction <add>, %0, %cst [2] : vector<2x64x256xf32> to vector<2x64xf32>
    %cst_2 = arith.constant 3.906250e-03 : f32
    %2 = vector.broadcast %cst_2 : f32 to vector<2x64xf32>
    %3 = arith.mulf %1, %2 : vector<2x64xf32>
    %c0_3 = arith.constant 0 : index
    %c0_4 = arith.constant 0 : index
    %4 = vector.load %arg2[%c0_3, %c0_4] : memref<64x16xf32, #tpu.memory_space<vmem>>, vector<64x16xf32>
    %cst_5 = arith.constant dense<0.000000e+00> : vector<2x16xf32>
    %5 = tpu.matmul %3, %4, %cst_5 {dimension_numbers = #tpu.dot_dimension_numbers<[1], [0], [0], [1], [0, 0, 1, 1], [], []>} : vector<2x64xf32>, vector<64x16xf32>, vector<2x16xf32> -> vector<2x16xf32>
    %c0_6 = arith.constant 0 : index
    %c0_7 = arith.constant 0 : index
    %6 = vector.load %arg3[%c0_6, %c0_7] : memref<1x16xf32, #tpu.memory_space<vmem>>, vector<1x16xf32>
    %7 = vector.broadcast %6 : vector<1x16xf32> to vector<2x16xf32>
    %8 = arith.addf %5, %7 : vector<2x16xf32>
    %cst_8 = arith.constant 0.000000e+00 : f32
    %9 = vector.broadcast %cst_8 : f32 to vector<2x16xf32>
    %10 = arith.maximumf %8, %9 : vector<2x16xf32>
    %c0_9 = arith.constant 0 : index
    %c0_10 = arith.constant 0 : index
    %11 = vector.load %arg4[%c0_9, %c0_10] : memref<16x64xf32, #tpu.memory_space<vmem>>, vector<16x64xf32>
    %cst_11 = arith.constant dense<0.000000e+00> : vector<2x64xf32>
    %12 = tpu.matmul %10, %11, %cst_11 {dimension_numbers = #tpu.dot_dimension_numbers<[1], [0], [0], [1], [0, 0, 1, 1], [], []>} : vector<2x16xf32>, vector<16x64xf32>, vector<2x64xf32> -> vector<2x64xf32>
    %c0_12 = arith.constant 0 : index
    %c0_13 = arith.constant 0 : index
    %13 = vector.load %arg5[%c0_12, %c0_13] : memref<1x64xf32, #tpu.memory_space<vmem>>, vector<1x64xf32>
    %14 = vector.broadcast %13 : vector<1x64xf32> to vector<2x64xf32>
    %15 = arith.addf %12, %14 : vector<2x64xf32>
    %cst_14 = arith.constant 0.000000e+00 : f32
    %16 = vector.broadcast %cst_14 : f32 to vector<2x64xf32>
    %17 = arith.subf %16, %15 : vector<2x64xf32>
    %18 = math.exp %17 : vector<2x64xf32>
    %cst_15 = arith.constant 1.000000e+00 : f32
    %19 = vector.broadcast %cst_15 : f32 to vector<2x64xf32>
    %20 = arith.addf %19, %18 : vector<2x64xf32>
    %cst_16 = arith.constant 1.000000e+00 : f32
    %21 = vector.broadcast %cst_16 : f32 to vector<2x64xf32>
    %22 = arith.divf %21, %20 : vector<2x64xf32>
    %23 = vector.shape_cast %22 : vector<2x64xf32> to vector<2x64x1xf32>
    %24 = vector.broadcast %23 : vector<2x64x1xf32> to vector<2x64x256xf32>
    %25 = arith.mulf %0, %24 : vector<2x64x256xf32>
    %c0_17 = arith.constant 0 : index
    %c0_18 = arith.constant 0 : index
    %c0_19 = arith.constant 0 : index
    %26 = vector.load %arg6[%c0_17, %c0_18, %c0_19] : memref<2x64x256xf32, #tpu.memory_space<vmem>>, vector<2x64x256xf32>
    tpu.vector_store %arg6[%c0_17, %c0_18, %c0_19], %25 {strides = array<i32>} : memref<2x64x256xf32, #tpu.memory_space<vmem>>, vector<2x64x256xf32>,
    return
  }
  func.func @transform_0(%arg0: i32) -> (i32, i32, i32) {
    %c0_i32 = arith.constant 0 : i32
    %c0_i32_0 = arith.constant 0 : i32
    %c0_i32_1 = arith.constant 0 : i32
    return %arg0, %c0_i32, %c0_i32_0 : i32, i32, i32
  }
  func.func @transform_1(%arg0: i32) -> (i32, i32) {
    %c0_i32 = arith.constant 0 : i32
    %c0_i32_0 = arith.constant 0 : i32
    %c0_i32_1 = arith.constant 0 : i32
    return %c0_i32, %c0_i32_0 : i32, i32
  }
  func.func @transform_2(%arg0: i32) -> (i32, i32) {
    %c0_i32 = arith.constant 0 : i32
    %c0_i32_0 = arith.constant 0 : i32
    %c0_i32_1 = arith.constant 0 : i32
    return %c0_i32, %c0_i32_0 : i32, i32
  }
  func.func @transform_3(%arg0: i32) -> (i32, i32) {
    %c0_i32 = arith.constant 0 : i32
    %c0_i32_0 = arith.constant 0 : i32
    %c0_i32_1 = arith.constant 0 : i32
    return %c0_i32, %c0_i32_0 : i32, i32
  }
  func.func @transform_4(%arg0: i32) -> (i32, i32) {
    %c0_i32 = arith.constant 0 : i32
    %c0_i32_0 = arith.constant 0 : i32
    %c0_i32_1 = arith.constant 0 : i32
    return %c0_i32, %c0_i32_0 : i32, i32
  }
  func.func @transform_5(%arg0: i32) -> (i32, i32, i32) {
    %c0_i32 = arith.constant 0 : i32
    %c0_i32_0 = arith.constant 0 : i32
    %c0_i32_1 = arith.constant 0 : i32
    return %arg0, %c0_i32, %c0_i32_0 : i32, i32, i32
  }
}

</mosaic_0001>

<bundles_post_ra>
// kernel: tpu_custom_call.1
= control target key start
LH: loop header
LB: loop body
LE: loop exit
PB: predicated region body
PF: predicated region fallthrough
CT: control target
= control target key end

     0   :  { %10 = vsyncpa [#allocation3], 0  ;;  %s1548_s0 = inlined_call_operand.hbm [shape: f32[4,64,256], index: 0, kind: input, shape index: {}]   ;;  %s1549_s1 = inlined_call_operand.vmem [shape: f32[64,16], index: 1, kind: input, shape index: {}]   ;;  %s1550_s2 = inlined_call_operand.vmem [shape: f32[1,16], index: 2, kind: input, shape index: {}]   ;;  %s1551_s3 = inlined_call_operand.vmem [shape: f32[16,64], index: 3, kind: input, shape index: {}]   ;;  %s1552_s4 = inlined_call_operand.vmem [shape: f32[1,64], index: 4, kind: input, shape index: {}]   ;;  %s1553_s5 = inlined_call_operand.hbm [shape: f32[4,64,256], index: 5, kind: output, shape index: {}]  }
   0x1   :  { %12 = vsyncpa [#allocation3 + $0x1], 0 }
   0x2   :  { %13 = vsyncpa [#allocation4], 0 }
   0x3   :  { %15 = vsyncpa [#allocation4 + $0x1], 0  ;;  %s1125_s18 = smov 0   ;;  %s1127_s19 = smov 0  }
   0x4   :  { %s1129_s20 = smov 0   ;;  %s1131_s21 = smov 0  }
   0x5 LB: > { %s1146_s22 = sadd.s32 4294967295, %s1084_s21   ;;  %s854_s23 = sadd.s32 4294967294, %s1084_s21   ;;  %s1084_s21 = sphi %s1131_s21, %s1587_s21   ;;  %s1080_s20 = sphi %s1129_s20, %s1586_s20   ;;  %s1076_s19 = sphi %s1127_s19, %s1585_s19   ;;  %s1072_s18 = sphi %s1125_s18, %s1584_s18  }
   0x6   : > { %s1150_s24 = sadd.s32 1, %s1084_s21   ;;  %s28_s25 = sadd.s32 1, %s1080_s20 }
   0x7   : > { %s25_s26 = ssub.s32 %s1084_s21, %s1150_s24  ;;  %p35_p0 = scmp.ne.s32.totalorder %s1080_s20, %s1076_s19 }
   0x8   : > { %p26_p1 = scmp.eq.s32.totalorder %s25_s26, 0  ;;  %p36_p2 = scmp.eq.s32.totalorder %s1084_s21, 0 }
   0x9   : > { %p41_p3 = scmp.ne.s32.totalorder %s1076_s19, %s1072_s18  ;;  %p42_p4 = scmp.eq.s32.totalorder %s1146_s22, 0 }
   0xa   : > { %s1162_s27 = scalar_select %p26_p1, %s1080_s20, %s28_s25  }
   0xb   : > { %p1164_p5 = por %p36_p2, %p35_p0  ;;  %p1168_p6 = por %p42_p4, %p41_p3 }
   0xc   : > { %p149_p7 = scmp.eq.s32.totalorder %s1146_s22, 1  ;;  %p155_p8 = scmp.eq.s32.totalorder %s854_s23, 1 }
   0xd   : > { %p943_p10 = scmp.lt.s32.totalorder %s1084_s21, 2  ;;  %s187_s7 = sand.u32 1, %s1080_s20  }
   0xe   : > { %p1175_p11 = por %p149_p7, %p35_p0  ;;  %p1179_p12 = por %p155_p8, %p41_p3 }
   0xf   : > { %s875_s8 = sshll.u32 %s1084_s21, 12  ;;  %s857_s9 = sshll.u32 %s187_s7, 8 }
  0x10   : > { %s1564_s30 = scalar_select %p1175_p11, 1, 0 }
  0x11   : > { %s1565_s6 = scalar_select %p1179_p12, 1, 0 }
  0x12   : > { %s1188_s12 = scalar_lea.hbm %s1548_s0, %s875_s8  ;;  %s191_s13 = scalar_lea.vmem [#allocation2], %s857_s9 }
  0x13   : > { %s199_s14 = sshll.u32 %s191_s13, 4  ;;  %p1192_p13 = pnand %p943_p10, %p1164_p5  ;;  %s1196_s14 = int_to_ptr.vmem [resolvable:$true] %s199_s14 }
  0x14   : > { %s1198_s16 = scalar_lea.sflag [#allocation3], %s187_s7  ;;  %s988_s17 = scalar_lea.hbm %s1188_s12, 4096 }
  0x15   : > { %p989_p0 = scmp.ne.s32.totalorder %s1188_s12, %s988_s17  ;;  %p990_p1 = pneg %p1192_p13 }
  0x16   : > { %s993_s26 = scalar_lea.hbm %s1548_s0, 8192  ;;  %p994_p4 = scmp.lt.u32.totalorder %s1188_s12, %s1548_s0 }
  0x17   : > { %p991_p2 = pnand %p990_p1, %p989_p0  ;;  %p995_p5 = scmp.lt.u32.totalorder %s993_s26, %s988_s17 }
  0x18   : > { %p997_p8 = scmp.lt.u32.totalorder %s988_s17, %s1188_s12 }
  0x19   : > { %p992_p3 = pneg %p991_p2  ;;  %p996_p7 = por %p995_p5, %p994_p4 }
  0x1b   : > { %p998_p10 = por %p997_p8, %p996_p7 }
  0x1d   : > { %p999_p9 = pnand %p998_p10, %p992_p3 }
  0x1f   : > { %1002 = shalt.err (!%p999_p9)
}
  0x20   : > { %s1003_s7 = scalar_lea.vmem %s1196_s14, 4096  ;;  %s1086_s9 = smov [#allocation2]  }
  0x21   : > { %p1004_p0 = scmp.ne.s32.totalorder %s1196_s14, %s1003_s7  ;;  %s1008_s10 = sshll.u32 %s1086_s9, 4  ;;  %s1009_s10 = int_to_ptr.vmem [resolvable:$false] %s1008_s10 }
  0x22   : > { %s1010_s11 = scalar_lea.vmem %s1009_s10, 8192  ;;  %p1011_p11 = scmp.lt.s32.totalorder %s1196_s14, %s1009_s10 }
  0x23   : > { %p1006_p2 = pnand %p1004_p0, %p990_p1  ;;  %p1012_p4 = scmp.lt.s32.totalorder %s1010_s11, %s1003_s7 }
  0x25   : > { %p1007_p12 = pneg %p1006_p2  ;;  %p1013_p5 = por %p1012_p4, %p1011_p11 }
  0x27   : > { %p1014_p7 = pnand %p1013_p5, %p1007_p12 }
  0x29   : > { %1017 = shalt.err (!%p1014_p7)
}
  0x2a   : > { %s1087_s13 = smov 256   ;;  %s1088_s17 = smov 16  }
  0x2b   : > { %938 = dma.hbm_to_vmem [thread:$0]  (!%p1192_p13), %s1188_s12, 4096, %s1196_s14, %s1198_s16, %s1087_s13, %s1087_s13, %s1088_s17  }
  0x2c   : > { %p861_p9 = scmp.ge.s32.totalorder %s1084_s21, 1  ;;  %p207_p1 = scmp.lt.s32.totalorder %s1084_s21, 3 }
  0x2e   : > { %p208_p3 = pnand %p861_p9, %p207_p1 }
  0x30   : > { %211 = sbr.rel (%p208_p3) target bundleno = 863 (0x35f), region = 40 }
  0x37   : > { %s1229_s23 = sand.u32 1, %s1076_s19  }
  0x38   : > { %s862_s25 = sshll.u32 %s1229_s23, 8  ;;  %s214_s26 = scalar_lea.sflag [#allocation3], %s1229_s23 }
  0x39   : > { %s1235_s28 = scalar_lea.vmem [#allocation2], %s862_s25 }
  0x3a   : > { %1063 = dma.done.wait (%p1168_p6), %s214_s26, 4096  }
  0x3b   : > { %1065 = vsyncadd (%p1168_p6), %s214_s26, 4294963200  ;;  %v1242_v0 = vld [vmem:[%s1235_s28 + $0x80] sm:$0xff]  ;;  %v1245_v1 = vld [vmem:[%s1235_s28 + $0x88] sm:$0xff]  ;;  %v1089_v51 = vmov 0.0|0.0   ;;  %vm1090_vm0 = vmmov 0   ;;  %v1091_v61 = vmov 0.0  }
  0x3c   : > { %v1248_v2 = vld [vmem:[%s1235_s28] sm:$0xff]  ;;  %v302_v3 = vadd.f32 %v1245_v1, %v1242_v0  ;;  %v1253_v4 = vld [vmem:[%s1235_s28 + $0x8] sm:$0xff]  ;;  %v1256_v5 = vld [vmem:[%s1235_s28 + $0x90] sm:$0xff]  ;;  %916 = vmatprep.subr.bf16.mxu0 %v1089_v51  ;;  %928 = vmatprep.subr.bf16.mxu1 %v1089_v51  ;;  %vm384_vm1 = vcmask 130112   ;;  %vm391_vm2 = vcmask 195712   ;;  %vm398_vm3 = vcmask 261312  }
  0x3d   : > { %v1259_v6 = vld [vmem:[%s1235_s28 + $0x98] sm:$0xff]  ;;  %v278_v7 = vadd.f32 %v1253_v4, %v1248_v2  ;;  %v1264_v8 = vld [vmem:[%s1235_s28 + $0x10] sm:$0xff]  ;;  %v1274_v12 = vld [vmem:[%s1235_s28 + $0xa0] sm:$0xff]  ;;  %906 = vmatprep.mubr.msk.f32.mxu0 %vm1090_vm0, %v1091_v61  ;;  %913 = vmatprep.mubr.msk.f32.mxu1 %vm1090_vm0, %v1091_v61  ;;  %vm405_vm4 = vcmask 326912   ;;  %vm412_vm5 = vcmask 392512   ;;  %vm419_vm6 = vcmask 458112  }
  0x3e   : > { %v1267_v9 = vld [vmem:[%s1235_s28 + $0x18] sm:$0xff]  ;;  %303 = vadd.xlane.f32.xlu1 %v302_v3  ;;  %v305_v10 = vadd.f32 %v1259_v6, %v1256_v5  ;;  %v1277_v13 = vld [vmem:[%s1235_s28 + $0xa8] sm:$0xff]  ;;  %v1280_v14 = vld [vmem:[%s1235_s28 + $0x20] sm:$0xff]  ;;  %vm426_vm7 = vcmask 523712   ;;  %vm467_vm8 = vcmask 1041409   ;;  %vm469_vm9 = vcmask 523264  }
  0x3f   : > { %279 = vadd.xlane.f32.xlu0 %v278_v7  ;;  %v281_v11 = vadd.f32 %v1267_v9, %v1264_v8  ;;  %v1283_v15 = vld [vmem:[%s1235_s28 + $0x28] sm:$0xff]  ;;  %v308_v16 = vadd.f32 %v1277_v13, %v1274_v12  ;;  %v1290_v18 = vld [vmem:[%s1235_s28 + $0xb0] sm:$0xff]  ;;  %v1293_v19 = vld [vmem:[%s1235_s28 + $0xb8] sm:$0xff]  ;;  %vm552_vm10 = vcmask 130048   ;;  %s1435_s13 = scalar_lea.vmem [#allocation5], %s862_s25  ;;  %s877_s25 = sshll.u32 %s1146_s22, 12 }
  0x40   : > { %v284_v17 = vadd.f32 %v1283_v15, %v1280_v14  ;;  %1567 = vst [vmem:[#allocation8_spill] sm:$0xff] %v1293_v19  ;;  %v1296_v20 = vld [vmem:[%s1235_s28 + $0x30] sm:$0xff]  ;;  %v1299_v21 = vld [vmem:[%s1235_s28 + $0x38] sm:$0xff]  ;;  %v311_v22 = vadd.f32 %v1293_v19, %v1290_v18  ;;  %v1306_v24 = vld [vmem:[%s1235_s28 + $0xc0] sm:$0xff]  ;;  %s781_s17 = sshll.u32 %s1435_s13, 4  ;;  %s1498_s29 = scalar_lea.hbm %s1553_s5, %s877_s25  ;;  %s1500_s17 = int_to_ptr.vmem [resolvable:$true] %s781_s17 }
  0x41   : > { %v287_v23 = vadd.f32 %v1299_v21, %v1296_v20  ;;  %v1309_v25 = vld [vmem:[%s1235_s28 + $0xc8] sm:$0xff]  ;;  %v1312_v26 = vld [vmem:[%s1235_s28 + $0x40] sm:$0xff]  ;;  %v1322_v30 = vld [vmem:[%s1235_s28 + $0xd0] sm:$0xff]  ;;  %s767_s22 = scalar_lea.sflag [#allocation4], %s1229_s23  ;;  %s1018_s12 = scalar_lea.vmem %s1500_s17, 4096 }
  0x42   : > { %306 = vadd.xlane.f32.xlu1 %v305_v10  ;;  %v1315_v27 = vld [vmem:[%s1235_s28 + $0x48] sm:$0xff]  ;;  %v314_v28 = vadd.f32 %v1309_v25, %v1306_v24  ;;  %1568 = vst [vmem:[#allocation9_spill] sm:$0xff] %v1322_v30  ;;  %v1325_v31 = vld [vmem:[%s1235_s28 + $0xd8] sm:$0xff]  ;;  %v1328_v32 = vld [vmem:[%s1235_s28 + $0x50] sm:$0xff]  ;;  %v373_v10 = vlaneseq  ;;  %p1019_p6 = scmp.ne.s32.totalorder %s1500_s17, %s1018_s12  ;;  %p1581_p11 = scmp.ne.s32.totalorder %s1564_s30, 0 }
  0x43   : > { %282 = vadd.xlane.f32.xlu0 %v281_v11  ;;  %v290_v29 = vadd.f32 %v1315_v27, %v1312_v26  ;;  %1569 = vst [vmem:[#allocation10_spill] sm:$0xff] %v1325_v31  ;;  %v1331_v33 = vld [vmem:[%s1235_s28 + $0x58] sm:$0xff]  ;;  %v317_v34 = vadd.f32 %v1325_v31, %v1322_v30  ;;  %v1338_v36 = vld [vmem:[%s1235_s28 + $0xe0] sm:$0xff]  ;;  %v1341_v37 = vld [vmem:[%s1235_s28 + $0xe8] sm:$0xff]  ;;  %s1092_s14 = smov [#allocation5]  }
  0x44   : > { %v293_v35 = vadd.f32 %v1331_v33, %v1328_v32  ;;  %1570 = vst [vmem:[#allocation11_spill] sm:$0xff] %v1338_v36  ;;  %1571 = vst [vmem:[#allocation12_spill] sm:$0xff] %v1341_v37  ;;  %v1344_v38 = vld [vmem:[%s1235_s28 + $0x60] sm:$0xff]  ;;  %v1347_v39 = vld [vmem:[%s1235_s28 + $0x68] sm:$0xff]  ;;  %v320_v40 = vadd.f32 %v1341_v37, %v1338_v36  ;;  %p1020_p12 = pnand %p1019_p6, %p1581_p11  ;;  %s1022_s15 = sshll.u32 %s1092_s14, 4  ;;  %s1023_s15 = int_to_ptr.vmem [resolvable:$false] %s1022_s15 }
  0x45   : > { %v296_v41 = vadd.f32 %v1347_v39, %v1344_v38  ;;  %v1354_v42 = vld [vmem:[%s1235_s28 + $0xf0] sm:$0xff]  ;;  %v1357_v43 = vld [vmem:[%s1235_s28 + $0xf8] sm:$0xff]  ;;  %v342_v48 = vld [vmem:[%s1549_s1] sm:$0xff]  ;;  %s1024_s16 = scalar_lea.vmem %s1023_s15, 8192  ;;  %p1025_p8 = scmp.lt.s32.totalorder %s1500_s17, %s1023_s15 }
  0x46   : > { %309 = vadd.xlane.f32.xlu1 %v308_v16  ;;  %1572 = vst [vmem:[#allocation13_spill] sm:$0xff] %v1354_v42  ;;  %1573 = vst [vmem:[#allocation14_spill] sm:$0xff] %v1357_v43  ;;  %v1360_v44 = vld [vmem:[%s1235_s28 + $0x70] sm:$0xff]  ;;  %v1363_v45 = vld [vmem:[%s1235_s28 + $0x78] sm:$0xff]  ;;  %v323_v46 = vadd.f32 %v1357_v43, %v1354_v42  ;;  %p1021_p13 = pneg %p1020_p12  ;;  %p1026_p10 = scmp.lt.s32.totalorder %s1024_s16, %s1018_s12 }
  0x47   : > { %285 = vadd.xlane.f32.xlu0 %v284_v17  ;;  %v299_v47 = vadd.f32 %v1363_v45, %v1360_v44  ;;  %v343_v49 = vld [vmem:[%s1549_s1 + $0x8] sm:$0xff]  ;;  %v344_v52 = vld [vmem:[%s1549_s1 + $0x10] sm:$0xff]  ;;  %v345_v53 = vld [vmem:[%s1549_s1 + $0x18] sm:$0xff]  ;;  %v374_v17 = vand.u32 127, %v373_v10 }
  0x48   : > { %v917_v50 = vpack.c.bf16 %v343_v49, %v342_v48  ;;  %v920_v54 = vpack.c.bf16 %v345_v53, %v344_v52  ;;  %v346_v55 = vld [vmem:[%s1549_s1 + $0x20] sm:$0xff]  ;;  %v347_v56 = vld [vmem:[%s1549_s1 + $0x28] sm:$0xff]  ;;  %v348_v58 = vld [vmem:[%s1549_s1 + $0x30] sm:$0xff]  ;;  %p1027_p0 = por %p1026_p10, %p1025_p8 }
  0x49   : > { %v923_v57 = vpack.c.bf16 %v347_v56, %v346_v55  ;;  %v349_v59 = vld [vmem:[%s1549_s1 + $0x38] sm:$0xff] }
  0x4a   : > { %312 = vadd.xlane.f32.xlu1 %v311_v22  ;;  %918 = vmatpush3.bf16.msra.mxu0 %v917_v50  ;;  %v926_v60 = vpack.c.bf16 %v349_v59, %v348_v58  ;;  %p1028_p2 = pnand %p1027_p0, %p1021_p13 }
  0x4b   : > { %288 = vadd.xlane.f32.xlu0 %v287_v23  ;;  %919 = vmatprep.subr.bf16.mxu0 %v1089_v51  ;;  %v1393_v23 = vshrl.u32 %v373_v10, 7 }
  0x4e   : > { %315 = vadd.xlane.f32.xlu1 %v314_v28  ;;  %921 = vmatpush3.bf16.msra.mxu0 %v920_v54 }
  0x4f   : > { %291 = vadd.xlane.f32.xlu0 %v290_v29  ;;  %922 = vmatprep.subr.bf16.mxu0 %v1089_v51  ;;  %v379_v29 = vadd.s32 4294967288, %v374_v17 }
  0x51   : > { %v382_v49 = vsub.s32 %v379_v29, %v1393_v23 }
  0x52   : > { %318 = vadd.xlane.f32.xlu1 %v317_v34  ;;  %924 = vmatpush3.bf16.msra.mxu0 %v923_v57  ;;  %v386_v34 = vadd.s32 4294967280, %v374_v17 }
  0x53   : > { %294 = vadd.xlane.f32.xlu0 %v293_v35  ;;  %925 = vmatprep.subr.bf16.mxu0 %v1089_v51  ;;  %v393_v35 = vadd.s32 4294967272, %v374_v17  ;;  %v414_v51 = vadd.s32 4294967248, %v374_v17 }
  0x54   : > { %v389_v50 = vsub.s32 %v386_v34, %v1393_v23 }
  0x55   : > { %v396_v53 = vsub.s32 %v393_v35, %v1393_v23 }
  0x56   : > { %321 = vadd.xlane.f32.xlu1 %v320_v40  ;;  %927 = vmatpush3.bf16.msra.mxu0 %v926_v60  ;;  %v400_v40 = vadd.s32 4294967264, %v374_v17 }
  0x57   : > { %297 = vadd.xlane.f32.xlu0 %v296_v41 }
  0x58   : > { %v403_v54 = vsub.s32 %v400_v40, %v1393_v23  ;;  %v421_v40 = vadd.s32 4294967240, %v374_v17 }
  0x5a   : > { %324 = vadd.xlane.f32.xlu1 %v323_v46  ;;  %v407_v46 = vadd.s32 4294967256, %v374_v17 }
  0x5b   : > { %300 = vadd.xlane.f32.xlu0 %v299_v47  ;;  %v377_v47 = vsub.s32 %v374_v17, %v1393_v23  ;;  %v424_v17 = vsub.s32 %v421_v40, %v1393_v23  ;;  %v544_v40 = vld [vmem:[%s1551_s3 + $0x8] sm:$0xff] }
  0x5c   : > { %v410_v57 = vsub.s32 %v407_v46, %v1393_v23 }
  0xcb   : > { %v304_v62 = vpop.xlane.xlu1 %303 }
  0xcc   : > { %v280_v63 = vpop.xlane.xlu0 %279  ;;  %v334_v59 = vmul.f32 0.00390625, %v304_v62 }
  0xcd   : > { %v326_v29 = vmul.f32 0.00390625, %v280_v63 }
  0xce   : > { %v431_v37 = vrot.slane %v334_v59, %v377_v47 }
  0xcf   : > { %v307_v3 = vpop.xlane.xlu1 %306  ;;  %v378_v19 = vrot.slane %v326_v29, %v377_v47 }
  0xd0   : > { %v283_v7 = vpop.xlane.xlu0 %282  ;;  %v335_v52 = vmul.f32 0.00390625, %v307_v3  ;;  %v417_v3 = vsub.s32 %v414_v51, %v1393_v23 }
  0xd1   : > { %v327_v55 = vmul.f32 0.00390625, %v283_v7 }
  0xd2   : > { %v435_v35 = vrot.slane %v335_v52, %v382_v49 }
  0xd3   : > { %v310_v11 = vpop.xlane.xlu1 %309  ;;  %v383_v7 = vrot.slane %v327_v55, %v382_v49 }
  0xd4   : > { %v286_v16 = vpop.xlane.xlu0 %285  ;;  %v336_v56 = vmul.f32 0.00390625, %v310_v11  ;;  %v436_v51 = vsel %vm384_vm1, %v435_v35, %v431_v37  ;;  %v543_v35 = vld [vmem:[%s1551_s3] sm:$0xff] }
  0xd5   : > { %v328_v60 = vmul.f32 0.00390625, %v286_v16  ;;  %v385_v49 = vsel %vm384_vm1, %v383_v7, %v378_v19  ;;  %v929_v7 = vpack.c.bf16 %v544_v40, %v543_v35  ;;  %v1574_v35 = vld [vmem:[#allocation8_spill] sm:$0xff] }
  0xd6   : > { %v440_v11 = vrot.slane %v336_v56, %v389_v50 }
  0xd7   : > { %v313_v22 = vpop.xlane.xlu1 %312  ;;  %v390_v62 = vrot.slane %v328_v60, %v389_v50  ;;  %930 = vmatpush3.bf16.msra.mxu1 %v929_v7 }
  0xd8   : > { %v289_v28 = vpop.xlane.xlu0 %288  ;;  %v337_v61 = vmul.f32 0.00390625, %v313_v22  ;;  %v441_v55 = vsel %vm391_vm2, %v440_v11, %v436_v51  ;;  %v864_v11 = vld [vmem:[%s1550_s2] ss:$0 sm:$0xff] }
  0xd9   : > { %v329_v34 = vmul.f32 0.00390625, %v289_v28  ;;  %v392_v59 = vsel %vm391_vm2, %v390_v62, %v385_v49 }
  0xda   : > { %v445_v16 = vrot.slane %v337_v61, %v396_v53 }
  0xdb   : > { %v316_v41 = vpop.xlane.xlu1 %315  ;;  %v397_v63 = vrot.slane %v329_v34, %v396_v53 }
  0xdc   : > { %v292_v48 = vpop.xlane.xlu0 %291  ;;  %v338_v43 = vmul.f32 0.00390625, %v316_v41  ;;  %v446_v47 = vsel %vm398_vm3, %v445_v16, %v441_v55  ;;  %v634_v55 = vsub.s32 0, %v1393_v23 }
  0xdd   : > { %v330_v42 = vmul.f32 0.00390625, %v292_v48  ;;  %v399_v37 = vsel %vm398_vm3, %v397_v63, %v392_v59  ;;  %v866_v63 = vld [vmem:[%s1552_s4] ss:$0 sm:$0xff] }
  0xde   : > { %v450_v28 = vrot.slane %v338_v43, %v403_v54 }
  0xdf   : > { %v319_v58 = vpop.xlane.xlu1 %318  ;;  %v404_v52 = vrot.slane %v330_v42, %v403_v54 }
  0xe0   : > { %v295_v10 = vpop.xlane.xlu0 %294  ;;  %v339_v31 = vmul.f32 0.00390625, %v319_v58 }
  0xe1   : > { %v331_v30 = vmul.f32 0.00390625, %v295_v10  ;;  %v406_v19 = vsel %vm405_vm4, %v404_v52, %v399_v37 }
  0xe2   : > { %v455_v48 = vrot.slane %v339_v31, %v410_v57  ;;  %v451_v31 = vsel %vm405_vm4, %v450_v28, %v446_v47 }
  0xe3   : > { %v322_v46 = vpop.xlane.xlu1 %321  ;;  %v411_v56 = vrot.slane %v331_v30, %v410_v57 }
  0xe4   : > { %v340_v22 = vmul.f32 0.00390625, %v322_v46  ;;  %v298_v36 = vpop.xlane.xlu0 %297  ;;  %v456_v54 = vsel %vm412_vm5, %v455_v48, %v451_v31 }
  0xe5   : > { %v332_v41 = vmul.f32 0.00390625, %v298_v36  ;;  %v413_v57 = vsel %vm412_vm5, %v411_v56, %v406_v19 }
  0xe6   : > { %v460_v58 = vrot.slane %v340_v22, %v417_v3 }
  0xe7   : > { %v325_v50 = vpop.xlane.xlu1 %324  ;;  %v418_v53 = vrot.slane %v332_v41, %v417_v3 }
  0xe8   : > { %v341_v43 = vmul.f32 0.00390625, %v325_v50  ;;  %v301_v36 = vpop.xlane.xlu0 %300  ;;  %v461_v60 = vsel %vm419_vm6, %v460_v58, %v456_v54  ;;  %v669_v50 = vsub.s32 1, %v1393_v23 }
  0xe9   : > { %v333_v42 = vmul.f32 0.00390625, %v301_v36  ;;  %v420_v10 = vsel %vm419_vm6, %v418_v53, %v413_v57 }
  0xea   : > { %v465_v30 = vrot.slane %v341_v43, %v424_v17 }
  0xeb   : > { %v425_v61 = vrot.slane %v333_v42, %v424_v17 }
  0xec   : > { %v466_v29 = vsel %vm426_vm7, %v465_v30, %v461_v60 }
  0xed   : > { %v427_v34 = vsel %vm426_vm7, %v425_v61, %v420_v10 }
  0xee   : > { %v468_v3 = vsel %vm467_vm8, %v466_v29, %v427_v34 }
  0xef   : > { %907 = vmatmul.mubr.msk.f32.vlgmr.msra.gmra.mrb[0].mxu0 %vm469_vm9, %v468_v3 }
 0x1c2   : > { %v538_v46 = vpop.f32.mrb[0].mxu0 }
 0x1c3   : > { %v539_v62 = vadd.f32 %v864_v11, %v538_v46  ;;  %v908_v16 = vpop.f32.mrb[1].mxu0  ;;  %v1576_v11 = vld [vmem:[#allocation12_spill] sm:$0xff]  ;;  %v1577_v46 = vld [vmem:[#allocation9_spill] sm:$0xff] }
 0x1c4   : > { %v1578_v16 = vld [vmem:[#allocation10_spill] sm:$0xff] }
 0x1c5   : > { %v542_v22 = vmax.f32 %v539_v62, 0.0 }
 0x1c7   : > { %914 = vmatmul.mubr.msk.f32.vlgmr.msra.gmra.mrb[0].mxu1 %vm552_vm10, %v542_v22 }
 0x29a   : > { %v622_v28 = vpop.f32.mrb[0].mxu1 }
 0x29b   : > { %v623_v41 = vadd.f32 %v866_v63, %v622_v28  ;;  %v915_v51 = vpop.f32.mrb[1].mxu1  ;;  %v1579_v63 = vld [vmem:[#allocation13_spill] sm:$0xff] }
 0x29d   : > { %v626_v52 = vsub.f32 0.0, %v623_v41  ;;  %v1580_v41 = vld [vmem:[#allocation14_spill] sm:$0xff] }
 0x29f   : > { %v627_v48 = vmul.f32 1.442695, %v626_v52 }
 0x2a1   : > { %984 = vpow2.f32 %v627_v48 }
 0x2ab   : > { %v985_v17 = vpop.eup %984 }
 0x2ac   : > { %v629_v49 = vadd.f32 1.0, %v985_v17 }
 0x2ae   : > { %986 = vrcp.f32 %v629_v49 }
 0x2b8   : > { %v987_v56 = vpop.eup %986 }
 0x2b9   : > { %v635_v58 = vrot.slane %v987_v56, %v634_v55  ;;  %v670_v59 = vrot.slane %v987_v56, %v669_v50 }
 0x2bb   : > { %641 = vbcast.lane.b32.xlu1 %v635_v58, 264  ;;  %637 = vbcast.lane.b32.xlu0 %v635_v58, 256 }
 0x2bf   : > { %645 = vbcast.lane.b32.xlu1 %v635_v58, 272  ;;  %653 = vbcast.lane.b32.xlu0 %v635_v58, 288 }
 0x2c3   : > { %649 = vbcast.lane.b32.xlu1 %v635_v58, 280  ;;  %661 = vbcast.lane.b32.xlu0 %v635_v58, 304 }
 0x2c7   : > { %657 = vbcast.lane.b32.xlu1 %v635_v58, 296  ;;  %672 = vbcast.lane.b32.xlu0 %v670_v59, 256 }
 0x2cb   : > { %665 = vbcast.lane.b32.xlu1 %v635_v58, 312  ;;  %680 = vbcast.lane.b32.xlu0 %v670_v59, 272 }
 0x2cf   : > { %676 = vbcast.lane.b32.xlu1 %v670_v59, 264  ;;  %688 = vbcast.lane.b32.xlu0 %v670_v59, 288 }
 0x2d3   : > { %684 = vbcast.lane.b32.xlu1 %v670_v59, 280  ;;  %696 = vbcast.lane.b32.xlu0 %v670_v59, 304 }
 0x2d7   : > { %692 = vbcast.lane.b32.xlu1 %v670_v59, 296 }
 0x2db   : > { %700 = vbcast.lane.b32.xlu1 %v670_v59, 312 }
 0x32d   : > { %v642_v47 = vpop.permute.xlu1 %641  ;;  %v638_v53 = vpop.permute.xlu0 %637 }
 0x32e   : > { %v704_v43 = vmul.f32 %v642_v47, %v1264_v8  ;;  %v705_v23 = vmul.f32 %v642_v47, %v1267_v9  ;;  %v702_v36 = vmul.f32 %v638_v53, %v1248_v2  ;;  %v703_v37 = vmul.f32 %v638_v53, %v1253_v4 }
 0x330   : > { %736 = vst [vmem:[%s1435_s13 + $0x10] sm:$0xff] %v704_v43  ;;  %737 = vst [vmem:[%s1435_s13 + $0x18] sm:$0xff] %v705_v23 }
 0x331   : > { %734 = vst [vmem:[%s1435_s13] sm:$0xff] %v702_v36  ;;  %735 = vst [vmem:[%s1435_s13 + $0x8] sm:$0xff] %v703_v37  ;;  %v646_v8 = vpop.permute.xlu1 %645  ;;  %v654_v2 = vpop.permute.xlu0 %653 }
 0x332   : > { %v706_v4 = vmul.f32 %v646_v8, %v1280_v14  ;;  %v707_v9 = vmul.f32 %v646_v8, %v1283_v15  ;;  %v710_v31 = vmul.f32 %v654_v2, %v1312_v26  ;;  %v711_v42 = vmul.f32 %v654_v2, %v1315_v27 }
 0x334   : > { %738 = vst [vmem:[%s1435_s13 + $0x20] sm:$0xff] %v706_v4  ;;  %739 = vst [vmem:[%s1435_s13 + $0x28] sm:$0xff] %v707_v9 }
 0x335   : > { %742 = vst [vmem:[%s1435_s13 + $0x40] sm:$0xff] %v710_v31  ;;  %743 = vst [vmem:[%s1435_s13 + $0x48] sm:$0xff] %v711_v42  ;;  %v650_v19 = vpop.permute.xlu1 %649  ;;  %v662_v54 = vpop.permute.xlu0 %661 }
 0x336   : > { %v708_v30 = vmul.f32 %v650_v19, %v1296_v20  ;;  %v709_v14 = vmul.f32 %v650_v19, %v1299_v21  ;;  %v714_v15 = vmul.f32 %v662_v54, %v1344_v38  ;;  %v715_v26 = vmul.f32 %v662_v54, %v1347_v39 }
 0x338   : > { %740 = vst [vmem:[%s1435_s13 + $0x30] sm:$0xff] %v708_v30  ;;  %741 = vst [vmem:[%s1435_s13 + $0x38] sm:$0xff] %v709_v14 }
 0x339   : > { %746 = vst [vmem:[%s1435_s13 + $0x60] sm:$0xff] %v714_v15  ;;  %747 = vst [vmem:[%s1435_s13 + $0x68] sm:$0xff] %v715_v26  ;;  %v658_v27 = vpop.permute.xlu1 %657  ;;  %v673_v57 = vpop.permute.xlu0 %672 }
 0x33a   : > { %v712_v60 = vmul.f32 %v658_v27, %v1328_v32  ;;  %v713_v20 = vmul.f32 %v658_v27, %v1331_v33  ;;  %v718_v21 = vmul.f32 %v673_v57, %v1242_v0  ;;  %v719_v38 = vmul.f32 %v673_v57, %v1245_v1 }
 0x33c   : > { %744 = vst [vmem:[%s1435_s13 + $0x50] sm:$0xff] %v712_v60  ;;  %745 = vst [vmem:[%s1435_s13 + $0x58] sm:$0xff] %v713_v20 }
 0x33d   : > { %750 = vst [vmem:[%s1435_s13 + $0x80] sm:$0xff] %v718_v21  ;;  %751 = vst [vmem:[%s1435_s13 + $0x88] sm:$0xff] %v719_v38  ;;  %v666_v39 = vpop.permute.xlu1 %665  ;;  %v681_v61 = vpop.permute.xlu0 %680 }
 0x33e   : > { %v716_v10 = vmul.f32 %v666_v39, %v1360_v44  ;;  %v717_v32 = vmul.f32 %v666_v39, %v1363_v45  ;;  %v722_v33 = vmul.f32 %v681_v61, %v1274_v12  ;;  %v723_v0 = vmul.f32 %v681_v61, %v1277_v13 }
 0x340   : > { %748 = vst [vmem:[%s1435_s13 + $0x70] sm:$0xff] %v716_v10  ;;  %749 = vst [vmem:[%s1435_s13 + $0x78] sm:$0xff] %v717_v32 }
 0x341   : > { %754 = vst [vmem:[%s1435_s13 + $0xa0] sm:$0xff] %v722_v33  ;;  %755 = vst [vmem:[%s1435_s13 + $0xa8] sm:$0xff] %v723_v0  ;;  %v677_v1 = vpop.permute.xlu1 %676  ;;  %v689_v29 = vpop.permute.xlu0 %688 }
 0x342   : > { %v720_v34 = vmul.f32 %v677_v1, %v1256_v5  ;;  %v721_v44 = vmul.f32 %v677_v1, %v1259_v6  ;;  %v726_v45 = vmul.f32 %v689_v29, %v1306_v24  ;;  %v727_v12 = vmul.f32 %v689_v29, %v1309_v25  ;;  %v1575_v6 = vld [vmem:[#allocation11_spill] sm:$0xff] }
 0x344   : > { %752 = vst [vmem:[%s1435_s13 + $0x90] sm:$0xff] %v720_v34  ;;  %753 = vst [vmem:[%s1435_s13 + $0x98] sm:$0xff] %v721_v44 }
 0x345   : > { %758 = vst [vmem:[%s1435_s13 + $0xc0] sm:$0xff] %v726_v45  ;;  %759 = vst [vmem:[%s1435_s13 + $0xc8] sm:$0xff] %v727_v12  ;;  %v685_v13 = vpop.permute.xlu1 %684  ;;  %v697_v3 = vpop.permute.xlu0 %696 }
 0x346   : > { %v724_v5 = vmul.f32 %v685_v13, %v1290_v18  ;;  %v725_v40 = vmul.f32 %v685_v13, %v1574_v35  ;;  %v730_v7 = vmul.f32 %v697_v3, %v1575_v6  ;;  %v731_v24 = vmul.f32 %v697_v3, %v1576_v11 }
 0x348   : > { %756 = vst [vmem:[%s1435_s13 + $0xb0] sm:$0xff] %v724_v5  ;;  %757 = vst [vmem:[%s1435_s13 + $0xb8] sm:$0xff] %v725_v40 }
 0x349   : > { %762 = vst [vmem:[%s1435_s13 + $0xe0] sm:$0xff] %v730_v7  ;;  %763 = vst [vmem:[%s1435_s13 + $0xe8] sm:$0xff] %v731_v24  ;;  %v693_v25 = vpop.permute.xlu1 %692 }
 0x34a   : > { %v728_v62 = vmul.f32 %v693_v25, %v1577_v46  ;;  %v729_v22 = vmul.f32 %v693_v25, %v1578_v16 }
 0x34c   : > { %760 = vst [vmem:[%s1435_s13 + $0xd0] sm:$0xff] %v728_v62  ;;  %761 = vst [vmem:[%s1435_s13 + $0xd8] sm:$0xff] %v729_v22 }
 0x34d   : > { %v701_v18 = vpop.permute.xlu1 %700 }
 0x34e   : > { %v732_v28 = vmul.f32 %v701_v18, %v1579_v63  ;;  %v733_v51 = vmul.f32 %v701_v18, %v1580_v41 }
 0x350   : > { %764 = vst [vmem:[%s1435_s13 + $0xf0] sm:$0xff] %v732_v28  ;;  %765 = vst [vmem:[%s1435_s13 + $0xf8] sm:$0xff] %v733_v51 }
 0x351   : > { %1031 = shalt.err (!%p1028_p2)
}
 0x352   : > { %s1032_s8 = scalar_lea.hbm %s1498_s29, 4096  ;;  %s1036_s10 = scalar_lea.hbm %s1553_s5, 8192 }
 0x353   : > { %p1033_p4 = scmp.ne.s32.totalorder %s1498_s29, %s1032_s8  ;;  %p1037_p9 = scmp.lt.u32.totalorder %s1498_s29, %s1553_s5 }
 0x354   : > { %p1038_p1 = scmp.lt.u32.totalorder %s1036_s10, %s1032_s8  ;;  %p1040_p6 = scmp.lt.u32.totalorder %s1032_s8, %s1498_s29 }
 0x355   : > { %p1034_p5 = pnand %p1033_p4, %p1581_p11 }
 0x356   : > { %p1039_p3 = por %p1038_p1, %p1037_p9 }
 0x357   : > { %p1035_p7 = pneg %p1034_p5 }
 0x358   : > { %p1041_p12 = por %p1040_p6, %p1039_p3 }
 0x35a   : > { %p1042_p13 = pnand %p1041_p12, %p1035_p7 }
 0x35c   : > { %1045 = shalt.err (!%p1042_p13)
}
 0x35d   : > { %s1093_s25 = smov 256   ;;  %s1094_s26 = smov 16  }
 0x35e   : > { %933 = dma.vmem_to_hbm [thread:$0]  (%p1581_p11), %s1500_s17, 4096, %s1498_s29, %s767_s22, %s1093_s25, %s1093_s25, %s1094_s26  }
 0x35f PF: > { %s796_s28 = sand.u32 1, %s1072_s18   ;;  %p1582_p8 = scmp.ne.s32.totalorder %s1565_s6, 0 }
 0x360   : > { %p1583_p10 = scmp.ge.s32.totalorder %s1084_s21, 2  ;;  %s797_s12 = scalar_lea.sflag [#allocation4], %s796_s28 }
 0x362   : > { %p940_p0 = pnand %p1583_p10, %p1582_p8 }
 0x364   : > { %1067 = dma.done.wait (!%p940_p0), %s797_s12, 4096  }
 0x365   : > { %1069 = vsyncadd (!%p940_p0), %s797_s12, 4294963200  ;;  %p18_p2 = scmp.ge.s32.totalorder %s1150_s24, 4   ;;  %s1584_s18 = smov %s1076_s19 }
 0x366   : > { %s1585_s19 = smov %s1080_s20  ;;  %s1586_s20 = smov %s1162_s27 }
 0x367   : > { %s1587_s21 = smov %s1150_s24  ;;  %20 = sbr.rel (!%p18_p2) target bundleno = 5 (0x5), region = 85 }
 0x36e   :  { %802 = vsyncpa [#allocation3], 1 }
 0x36f   :  { %804 = vsyncpa [#allocation3 + $0x1], 1 }
 0x370   :  { %805 = vsyncpa [#allocation4], 1 }
 0x371   :  { %807 = vsyncpa [#allocation4 + $0x1], 1 }

</bundles_post_ra>
